<compile_context>
chip_gen: v7x
topology: tpu7x:2x2x1
jax: 0.10.0
libtpu: 0.0.40
codegen_flags: <defaults>
</compile_context>

<pallas_src>
import functools
import math

import jax
import jax.numpy as jnp
from jax import lax
from jax.experimental import pallas as pl
from jax.experimental.pallas import tpu as pltpu


# --------------------------------------------------------------------------- #
# Kernels
# --------------------------------------------------------------------------- #
def _kv_projection_kernel(k_ref, v_ref, wk_ref, bk_ref, wv_ref, bv_ref,
                          kp_ref, vp_ref):
    # k_ref/v_ref: (TM, D) bf16; weights (D, D) bf16; biases (1, D) f32.
    kp = jnp.dot(k_ref[...], wk_ref[...],
                 preferred_element_type=jnp.float32) + bk_ref[...]
    vp = jnp.dot(v_ref[...], wv_ref[...],
                 preferred_element_type=jnp.float32) + bv_ref[...]
    kp_ref[...] = kp.astype(kp_ref.dtype)
    vp_ref[...] = vp.astype(vp_ref.dtype)


def _attention_kernel(q_ref, kp_ref, vp_ref,
                      wq_ref, bq_ref, wo_ref, bo_ref,
                      out_ref, smean_ref,
                      *, s_valid, use_bf16_exp):
    # Grid: (batch, query_tile).  Block views:
    #   q_ref           : (1, TQ, D)     bf16
    #   kp_ref / vp_ref : (1, S_pad, D)  bf16 (projected K / V, resident per batch)
    #   wq/wo           : (D, D) bf16 ; bq/bo : (1, D) f32
    #   out_ref         : (1, TQ, D)
    #   smean_ref       : (1, 1, S_pad)  f32 accumulator across query tiles
    qi = pl.program_id(1)
    TQ = q_ref.shape[1]
    S_pad = kp_ref.shape[1]
    padded = (s_valid != S_pad)

    @pl.when(qi == 0)
    def _():
        smean_ref[...] = jnp.zeros_like(smean_ref)

    # Query projection (1/sqrt(D) already folded into wq/bq by the wrapper).
    Q = jnp.dot(q_ref[0], wq_ref[...],
                preferred_element_type=jnp.float32) + bq_ref[...]      # (TQ, D)

    # scores = Q_scaled @ K^T, contracting last dims (no explicit transpose).
    scores = lax.dot_general(
        Q.astype(jnp.bfloat16), kp_ref[0],
        dimension_numbers=(((1,), (1,)), ((), ())),
        preferred_element_type=jnp.float32)                            # (TQ, S_pad)

    if padded:
        key_idx = lax.broadcasted_iota(jnp.int32, (1, S_pad), 1)
        scores = jnp.where(key_idx < s_valid, scores, -1e30)

    # Row softmax (max/sum/normalize in f32; exp optionally bf16 on v6e/v7x).
    m = jnp.max(scores, axis=-1, keepdims=True)
    if use_bf16_exp:
        p = jnp.exp((scores - m).astype(jnp.bfloat16)).astype(jnp.float32)
    else:
        p = jnp.exp(scores - m)
    denom = jnp.sum(p, axis=-1, keepdims=True)
    # approx reciprocal (EUP): ~1e-3 relative error on softmax rows — deliberate.
    inv_denom = pl.reciprocal(denom, approx=True)
    if padded:
        # Zero the normalization of padded query rows so they neither pollute
        # the scores_mean column-sum nor cost anything downstream.
        row_idx = lax.broadcasted_iota(jnp.int32, (TQ, 1), 0) + qi * TQ
        inv_denom = jnp.where(row_idx < s_valid, inv_denom, 0.0)

    attn = p * inv_denom                                               # (TQ, S_pad) f32

    # Partial mean of attn over the query axis (dim=-2): f32 axis-0 reduction
    # on the VPU/XLU (keeps the MXU free), accumulated into the resident block.
    colsum = jnp.sum(attn, axis=0, keepdims=True)                      # (1, S_pad)
    smean_ref[...] += (colsum * (1.0 / s_valid)).reshape(1, 1, S_pad)

    # Attention-weighted values + output projection (bf16 MXU, f32 accumulate).
    x = jnp.dot(attn.astype(jnp.bfloat16), vp_ref[0],
                preferred_element_type=jnp.float32)                    # (TQ, D)
    y = jnp.dot(x.astype(jnp.bfloat16), wo_ref[...],
                preferred_element_type=jnp.float32) + bo_ref[...]
    out_ref[0] = y.astype(out_ref.dtype)


# --------------------------------------------------------------------------- #
# Wrapper
# --------------------------------------------------------------------------- #
def _device_kind():
    try:
        return jax.devices()[0].device_kind.lower()
    except Exception:
        return ""


def self_attention_pallas(q, k, v, params, *, max_query_tile=None):
    """Forward pass of SelfAttention (eval mode).

    params: dict with 'w0'..'w3' of shape (D, D) (PyTorch (out,in) layout) and
    'b0'..'b3' of shape (D,).  Returns (output (B,S,D), scores_mean (B,S)).
    max_query_tile (optional, multiple of 128): cap on the query tile size.
    """
    B, S, D = q.shape
    out_dtype = q.dtype

    kind = _device_kind()
    big_vmem = any(t in kind for t in ("v3", "v4", "v5", "v6"))   # 128 MiB VMEM gens
    use_bf16_exp = any(t in kind for t in ("v6", "v7"))           # bf16 EUP gens
    vmem_limit = (100 if big_vmem else 48) * 1024 * 1024

    # Pad the sequence to a multiple of 128 (lane/MXU alignment). Padded keys
    # are masked in-kernel; padded query rows are zeroed and sliced off.
    S_pad = ((S + 127) // 128) * 128
    tq_cands = (512, 256, 128) if big_vmem else (256, 128)
    if max_query_tile is not None:
        tq_cands = tuple(t for t in tq_cands if t <= max_query_tile)
    TQ = next((t for t in tq_cands if S_pad % t == 0), 128)
    nq = S_pad // TQ

    inv_sqrt_d = 1.0 / math.sqrt(D)
    # Pre-transpose weights to (D_in, D_out), pre-cast matmul operands to bf16,
    # fold the 1/sqrt(D) scale into the query projection; biases stay f32 (1,D).
    wq = (params["w0"].T * inv_sqrt_d).astype(jnp.bfloat16)
    bq = (params["b0"] * inv_sqrt_d).reshape(1, D).astype(jnp.float32)
    wk = params["w1"].T.astype(jnp.bfloat16)
    bk = params["b1"].reshape(1, D).astype(jnp.float32)
    wv = params["w2"].T.astype(jnp.bfloat16)
    bv = params["b2"].reshape(1, D).astype(jnp.float32)
    wo = params["w3"].T.astype(jnp.bfloat16)
    bo = params["b3"].reshape(1, D).astype(jnp.float32)

    def _pad_cast(x):
        x = x.astype(jnp.bfloat16)
        if S_pad != S:
            x = jnp.pad(x, ((0, 0), (0, S_pad - S), (0, 0)))
        return x

    q_bf, k_bf, v_bf = _pad_cast(q), _pad_cast(k), _pad_cast(v)

    # ---- Stage 1: K/V projection GEMM over the flattened (B*S_pad, D) matrix.
    Mtot = B * S_pad
    TM = next(t for t in (512, 256, 128) if Mtot % t == 0)
    k2d = k_bf.reshape(Mtot, D)
    v2d = v_bf.reshape(Mtot, D)

    kp2d, vp2d = pl.pallas_call(
        _kv_projection_kernel,
        out_shape=(jax.ShapeDtypeStruct((Mtot, D), jnp.bfloat16),
                   jax.ShapeDtypeStruct((Mtot, D), jnp.bfloat16)),
        grid_spec=pltpu.PrefetchScalarGridSpec(
            num_scalar_prefetch=0,
            grid=(Mtot // TM,),
            in_specs=[
                pl.BlockSpec((TM, D), lambda m: (m, 0)),
                pl.BlockSpec((TM, D), lambda m: (m, 0)),
                pl.BlockSpec((D, D), lambda m: (0, 0),
                             pipeline_mode=pl.Buffered(1)),
                pl.BlockSpec((1, D), lambda m: (0, 0),
                             pipeline_mode=pl.Buffered(1)),
                pl.BlockSpec((D, D), lambda m: (0, 0),
                             pipeline_mode=pl.Buffered(1)),
                pl.BlockSpec((1, D), lambda m: (0, 0),
                             pipeline_mode=pl.Buffered(1)),
            ],
            out_specs=[
                pl.BlockSpec((TM, D), lambda m: (m, 0)),
                pl.BlockSpec((TM, D), lambda m: (m, 0)),
            ]),
        compiler_params=pltpu.CompilerParams(
            dimension_semantics=("parallel",),
            vmem_limit_bytes=vmem_limit),
    )(k2d, v2d, wk, bk, wv, bv)

    kp = kp2d.reshape(B, S_pad, D)
    vp = vp2d.reshape(B, S_pad, D)

    # ---- Stage 2: query-tiled attention + output projection.
    kernel = functools.partial(_attention_kernel, s_valid=S,
                               use_bf16_exp=use_bf16_exp)

    out, smean = pl.pallas_call(
        kernel,
        out_shape=(jax.ShapeDtypeStruct((B, S_pad, D), out_dtype),
                   jax.ShapeDtypeStruct((B, 1, S_pad), jnp.float32)),
        grid_spec=pltpu.PrefetchScalarGridSpec(
            num_scalar_prefetch=0,
            grid=(B, nq),
            in_specs=[
                pl.BlockSpec((1, TQ, D), lambda b, i: (b, i, 0)),        # q
                pl.BlockSpec((1, S_pad, D), lambda b, i: (b, 0, 0),      # K proj
                             pipeline_mode=pl.Buffered(1)),
                pl.BlockSpec((1, S_pad, D), lambda b, i: (b, 0, 0),      # V proj
                             pipeline_mode=pl.Buffered(1)),
                pl.BlockSpec((D, D), lambda b, i: (0, 0),                # wq
                             pipeline_mode=pl.Buffered(1)),
                pl.BlockSpec((1, D), lambda b, i: (0, 0),                # bq
                             pipeline_mode=pl.Buffered(1)),
                pl.BlockSpec((D, D), lambda b, i: (0, 0),                # wo
                             pipeline_mode=pl.Buffered(1)),
                pl.BlockSpec((1, D), lambda b, i: (0, 0),                # bo
                             pipeline_mode=pl.Buffered(1)),
            ],
            out_specs=[
                pl.BlockSpec((1, TQ, D), lambda b, i: (b, i, 0)),
                pl.BlockSpec((1, 1, S_pad), lambda b, i: (b, 0, 0)),
            ]),
        compiler_params=pltpu.CompilerParams(
            dimension_semantics=("parallel", "arbitrary"),
            vmem_limit_bytes=vmem_limit),
    )(q_bf, kp, vp, wq, bq, wo, bo)

    out = out[:, :S, :]
    smean = smean.reshape(B, S_pad)[:, :S]
    return out, smean


# --------------------------------------------------------------------------- #
# Pure-JAX reference and test
# --------------------------------------------------------------------------- #
def self_attention_ref(q, k, v, params):
    """Pure-JAX reference mirroring the PyTorch forward (eval mode)."""
    D = q.shape[-1]

    def lin(x, w, b):
        return x @ w.T + b

    Q = lin(q, params["w0"], params["b0"])
    K = lin(k, params["w1"], params["b1"])
    V = lin(v, params["w2"], params["b2"])
    scores = (Q @ jnp.swapaxes(K, -2, -1)) / math.sqrt(D)
    scores = jax.nn.softmax(scores, axis=-1)
    x = scores @ V
    x = lin(x, params["w3"], params["b3"])
    return x, jnp.mean(scores, axis=-2)


def init_params(key, d_dim):
    """Deterministic init matching nn.Linear default: U(-1/sqrt(in), 1/sqrt(in))."""
    bound = 1.0 / math.sqrt(d_dim)
    params = {}
    for i in range(4):
        key, kw, kb = jax.random.split(key, 3)
        params[f"w{i}"] = jax.random.uniform(
            kw, (d_dim, d_dim), jnp.float32, -bound, bound)
        params[f"b{i}"] = jax.random.uniform(
            kb, (d_dim,), jnp.float32, -bound, bound)
    return params


if __name__ == "__main__":
    def run_case(B, S, D, key, **kw):
        kparams, kq, kk, kv = jax.random.split(key, 4)
        params = init_params(kparams, D)
        q = jax.random.normal(kq, (B, S, D), jnp.float32)
        k = jax.random.normal(kk, (B, S, D), jnp.float32)
        v = jax.random.normal(kv, (B, S, D), jnp.float32)

        out, smean = self_attention_pallas(q, k, v, params, **kw)
        out = jax.block_until_ready(out)
        smean = jax.block_until_ready(smean)

        out_ref, smean_ref = self_attention_ref(q, k, v, params)
        assert out.shape == (B, S, D) and smean.shape == (B, S)
        # bf16 MXU operands / bf16 inputs (f32 accumulation): relaxed tolerance.
        assert jnp.allclose(out, out_ref, atol=2e-2, rtol=2e-2), \
            float(jnp.max(jnp.abs(out - out_ref)))
        assert jnp.allclose(smean, smean_ref, atol=2e-2, rtol=2e-2), \
            float(jnp.max(jnp.abs(smean - smean_ref)))

    key = jax.random.PRNGKey(0)
    k1, k2 = jax.random.split(key)
    # Small ragged case: S=8 padded to 128 (exercises key + query-row masking).
    run_case(2, 8, 32, k1)
    # Multi-query-tile case: S=256, TQ capped at 128 -> nq=2 (exercises resident
    # K/V reuse across query tiles and the scores_mean accumulation path).
    run_case(2, 256, 32, k2, max_query_tile=128)

    print("KERNEL_OK")
</pallas_src>

<mosaic_0001>
module attributes {stable_mosaic.version = 11 : i64} {
  func.func @_kv_projection_kernel(%arg0: i32, %arg1: memref<256x32xbf16, #tpu.memory_space<vmem>>, %arg2: memref<256x32xbf16, #tpu.memory_space<vmem>>, %arg3: memref<32x32xbf16, #tpu.memory_space<vmem>>, %arg4: memref<1x32xf32, #tpu.memory_space<vmem>>, %arg5: memref<32x32xbf16, #tpu.memory_space<vmem>>, %arg6: memref<1x32xf32, #tpu.memory_space<vmem>>, %arg7: memref<256x32xbf16, #tpu.memory_space<vmem>>, %arg8: memref<256x32xbf16, #tpu.memory_space<vmem>>) attributes {dimension_semantics = [#tpu.dimension_semantics<parallel>], iteration_bounds = array<i64: 1>, scalar_prefetch = 0 : i64, scratch_operands = 0 : i64, tpu.core_type = #tpu.core_type<tc>, window_params = [{transform_indices = @transform_0, window_bounds = array<i64: 256, 32>}, {transform_indices = @transform_1, window_bounds = array<i64: 256, 32>}, {pipeline_mode = #tpu.pipeline_mode<synchronous>, transform_indices = @transform_2, window_bounds = array<i64: 32, 32>}, {pipeline_mode = #tpu.pipeline_mode<synchronous>, transform_indices = @transform_3, window_bounds = array<i64: 1, 32>}, {pipeline_mode = #tpu.pipeline_mode<synchronous>, transform_indices = @transform_4, window_bounds = array<i64: 32, 32>}, {pipeline_mode = #tpu.pipeline_mode<synchronous>, transform_indices = @transform_5, window_bounds = array<i64: 1, 32>}, {transform_indices = @transform_6, window_bounds = array<i64: 256, 32>}, {transform_indices = @transform_7, window_bounds = array<i64: 256, 32>}]} {
    %c0 = arith.constant 0 : index
    %c0_0 = arith.constant 0 : index
    %0 = vector.load %arg1[%c0, %c0_0] : memref<256x32xbf16, #tpu.memory_space<vmem>>, vector<256x32xbf16>
    %c0_1 = arith.constant 0 : index
    %c0_2 = arith.constant 0 : index
    %1 = vector.load %arg3[%c0_1, %c0_2] : memref<32x32xbf16, #tpu.memory_space<vmem>>, vector<32x32xbf16>
    %cst = arith.constant dense<0.000000e+00> : vector<256x32xf32>
    %2 = tpu.matmul %0, %1, %cst {dimension_numbers = #tpu.dot_dimension_numbers<[1], [0], [0], [1], [0, 0, 1, 1], [], []>} : vector<256x32xbf16>, vector<32x32xbf16>, vector<256x32xf32> -> vector<256x32xf32>
    %c0_3 = arith.constant 0 : index
    %c0_4 = arith.constant 0 : index
    %3 = vector.load %arg4[%c0_3, %c0_4] : memref<1x32xf32, #tpu.memory_space<vmem>>, vector<1x32xf32>
    %4 = vector.broadcast %3 : vector<1x32xf32> to vector<256x32xf32>
    %5 = arith.addf %2, %4 : vector<256x32xf32>
    %c0_5 = arith.constant 0 : index
    %c0_6 = arith.constant 0 : index
    %6 = vector.load %arg2[%c0_5, %c0_6] : memref<256x32xbf16, #tpu.memory_space<vmem>>, vector<256x32xbf16>
    %c0_7 = arith.constant 0 : index
    %c0_8 = arith.constant 0 : index
    %7 = vector.load %arg5[%c0_7, %c0_8] : memref<32x32xbf16, #tpu.memory_space<vmem>>, vector<32x32xbf16>
    %cst_9 = arith.constant dense<0.000000e+00> : vector<256x32xf32>
    %8 = tpu.matmul %6, %7, %cst_9 {dimension_numbers = #tpu.dot_dimension_numbers<[1], [0], [0], [1], [0, 0, 1, 1], [], []>} : vector<256x32xbf16>, vector<32x32xbf16>, vector<256x32xf32> -> vector<256x32xf32>
    %c0_10 = arith.constant 0 : index
    %c0_11 = arith.constant 0 : index
    %9 = vector.load %arg6[%c0_10, %c0_11] : memref<1x32xf32, #tpu.memory_space<vmem>>, vector<1x32xf32>
    %10 = vector.broadcast %9 : vector<1x32xf32> to vector<256x32xf32>
    %11 = arith.addf %8, %10 : vector<256x32xf32>
    %12 = arith.truncf %5 : vector<256x32xf32> to vector<256x32xbf16>
    %c0_12 = arith.constant 0 : index
    %c0_13 = arith.constant 0 : index
    %13 = vector.load %arg7[%c0_12, %c0_13] : memref<256x32xbf16, #tpu.memory_space<vmem>>, vector<256x32xbf16>
    tpu.vector_store %arg7[%c0_12, %c0_13], %12 {strides = array<i32>} : memref<256x32xbf16, #tpu.memory_space<vmem>>, vector<256x32xbf16>,
    %14 = arith.truncf %11 : vector<256x32xf32> to vector<256x32xbf16>
    %c0_14 = arith.constant 0 : index
    %c0_15 = arith.constant 0 : index
    %15 = vector.load %arg8[%c0_14, %c0_15] : memref<256x32xbf16, #tpu.memory_space<vmem>>, vector<256x32xbf16>
    tpu.vector_store %arg8[%c0_14, %c0_15], %14 {strides = array<i32>} : memref<256x32xbf16, #tpu.memory_space<vmem>>, vector<256x32xbf16>,
    return
  }
  func.func @transform_0(%arg0: i32) -> (i32, i32) {
    %c0_i32 = arith.constant 0 : i32
    %c0_i32_0 = arith.constant 0 : i32
    return %arg0, %c0_i32 : i32, i32
  }
  func.func @transform_1(%arg0: i32) -> (i32, i32) {
    %c0_i32 = arith.constant 0 : i32
    %c0_i32_0 = arith.constant 0 : i32
    return %arg0, %c0_i32 : i32, i32
  }
  func.func @transform_2(%arg0: i32) -> (i32, i32) {
    %c0_i32 = arith.constant 0 : i32
    %c0_i32_0 = arith.constant 0 : i32
    %c0_i32_1 = arith.constant 0 : i32
    return %c0_i32, %c0_i32_0 : i32, i32
  }
  func.func @transform_3(%arg0: i32) -> (i32, i32) {
    %c0_i32 = arith.constant 0 : i32
    %c0_i32_0 = arith.constant 0 : i32
    %c0_i32_1 = arith.constant 0 : i32
    return %c0_i32, %c0_i32_0 : i32, i32
  }
  func.func @transform_4(%arg0: i32) -> (i32, i32) {
    %c0_i32 = arith.constant 0 : i32
    %c0_i32_0 = arith.constant 0 : i32
    %c0_i32_1 = arith.constant 0 : i32
    return %c0_i32, %c0_i32_0 : i32, i32
  }
  func.func @transform_5(%arg0: i32) -> (i32, i32) {
    %c0_i32 = arith.constant 0 : i32
    %c0_i32_0 = arith.constant 0 : i32
    %c0_i32_1 = arith.constant 0 : i32
    return %c0_i32, %c0_i32_0 : i32, i32
  }
  func.func @transform_6(%arg0: i32) -> (i32, i32) {
    %c0_i32 = arith.constant 0 : i32
    %c0_i32_0 = arith.constant 0 : i32
    return %arg0, %c0_i32 : i32, i32
  }
  func.func @transform_7(%arg0: i32) -> (i32, i32) {
    %c0_i32 = arith.constant 0 : i32
    %c0_i32_0 = arith.constant 0 : i32
    return %arg0, %c0_i32 : i32, i32
  }
}

</mosaic_0001>

<bundles_post_ra>
// kernel: tpu_custom_call.1
= control target key start
LH: loop header
LB: loop body
LE: loop exit
PB: predicated region body
PF: predicated region fallthrough
CT: control target
= control target key end

     0   :  { %vm161_vm0 = vcmask 261120   ;;  %vm843_vm1 = vcmask 257024   ;;  %s1896_s2 = inlined_call_operand.vmem [shape: bf16[32,32], index: 2, kind: input, shape index: {}]   ;;  %s1897_s4 = inlined_call_operand.vmem [shape: bf16[32,32], index: 4, kind: input, shape index: {}]   ;;  %s1898_s0 = inlined_call_operand.vmem [shape: bf16[256,32], index: 0, kind: input, shape index: {}]   ;;  %s1899_s1 = inlined_call_operand.vmem [shape: bf16[256,32], index: 1, kind: input, shape index: {}]   ;;  %s1900_s3 = inlined_call_operand.vmem [shape: f32[1,32], index: 3, kind: input, shape index: {}]   ;;  %s1901_s5 = inlined_call_operand.vmem [shape: f32[1,32], index: 5, kind: input, shape index: {}]   ;;  %s1902_s6 = inlined_call_operand.vmem [shape: bf16[256,32], index: 6, kind: output, shape index: {0}]   ;;  %s1903_s7 = inlined_call_operand.vmem [shape: bf16[256,32], index: 7, kind: output, shape index: {1}]  }
   0x1   :  { %v1350_v0 = vld [vmem:[%s1896_s2] sm:$0xff]   ;;  %v1352_v2 = vld [vmem:[%s1896_s2 + $0x8] sm:$0xff]   ;;  %v1358_v8 = vld [vmem:[%s1898_s0 + $0x10] sm:$0xff]  }
   0x2   :  { %v1351_v1 = vld [vmem:[%s1897_s4] sm:$0xff]   ;;  %1278 = vmatprep.subr.bf16.mxu0 %v1350_v0  ;;  %v1353_v3 = vld [vmem:[%s1897_s4 + $0x8] sm:$0xff]   ;;  %v1359_v9 = vld [vmem:[%s1899_s1 + $0x10] sm:$0xff]  }
   0x3   :  { %1314 = vmatprep.subr.bf16.mxu1 %v1351_v1  ;;  %1279 = vmatpush3.bf16.msra.mxu0 %v1350_v0  ;;  %v1354_v4 = vld [vmem:[%s1898_s0] sm:$0xff]   ;;  %v1356_v6 = vld [vmem:[%s1898_s0 + $0x8] sm:$0xff]   ;;  %v1360_v10 = vld [vmem:[%s1898_s0 + $0x18] sm:$0xff]  }
   0x4   :  { %1315 = vmatpush3.bf16.msra.mxu1 %v1351_v1  ;;  %1280 = vmatprep.subr.bf16.mxu0 %v1352_v2  ;;  %v1355_v5 = vld [vmem:[%s1899_s1] sm:$0xff]   ;;  %v1357_v7 = vld [vmem:[%s1899_s1 + $0x8] sm:$0xff]   ;;  %v1361_v11 = vld [vmem:[%s1899_s1 + $0x18] sm:$0xff]  }
   0x5   :  { %1316 = vmatprep.subr.bf16.mxu1 %v1353_v3  ;;  %1282 = vmatprep.mubr.msk.bf16.mxu0 %vm161_vm0, %v1354_v4  ;;  %v1362_v12 = vld [vmem:[%s1898_s0 + $0x20] sm:$0xff]   ;;  %v1364_v14 = vld [vmem:[%s1898_s0 + $0x28] sm:$0xff]   ;;  %v1366_v16 = vld [vmem:[%s1898_s0 + $0x30] sm:$0xff]  }
   0x6   :  { %1318 = vmatprep.mubr.msk.bf16.mxu1 %vm161_vm0, %v1355_v5  ;;  %v1363_v13 = vld [vmem:[%s1899_s1 + $0x20] sm:$0xff]   ;;  %v1365_v15 = vld [vmem:[%s1899_s1 + $0x28] sm:$0xff]   ;;  %v1367_v17 = vld [vmem:[%s1899_s1 + $0x30] sm:$0xff]  }
   0x7   :  { %1281 = vmatpush3.bf16.msra.mxu0 %v1352_v2  ;;  %v1368_v18 = vld [vmem:[%s1898_s0 + $0x38] sm:$0xff]   ;;  %v1370_v20 = vld [vmem:[%s1898_s0 + $0x40] sm:$0xff]   ;;  %v1372_v22 = vld [vmem:[%s1898_s0 + $0x48] sm:$0xff]  }
   0x8   :  { %1317 = vmatpush3.bf16.msra.mxu1 %v1353_v3  ;;  %v1369_v19 = vld [vmem:[%s1899_s1 + $0x38] sm:$0xff]   ;;  %v1371_v21 = vld [vmem:[%s1899_s1 + $0x40] sm:$0xff]   ;;  %v1373_v23 = vld [vmem:[%s1899_s1 + $0x48] sm:$0xff]  }
   0x9   :  { %v1374_v24 = vld [vmem:[%s1898_s0 + $0x50] sm:$0xff]   ;;  %v1376_v26 = vld [vmem:[%s1898_s0 + $0x58] sm:$0xff]   ;;  %v1378_v28 = vld [vmem:[%s1898_s0 + $0x60] sm:$0xff]  }
   0xa   :  { %1283 = vmatmul.mubr.msk.bf16.vlgmr.msra.gmra.mrb[0].mxu0 %vm161_vm0, %v1356_v6  ;;  %v1375_v25 = vld [vmem:[%s1899_s1 + $0x50] sm:$0xff]   ;;  %v1377_v27 = vld [vmem:[%s1899_s1 + $0x58] sm:$0xff]   ;;  %v1379_v29 = vld [vmem:[%s1899_s1 + $0x60] sm:$0xff]  }
   0xb   :  { %1319 = vmatmul.mubr.msk.bf16.vlgmr.msra.gmra.mrb[0].mxu1 %vm161_vm0, %v1357_v7  ;;  %1286 = vmatprep.mubr.msk.bf16.mxu0 %vm161_vm0, %v1358_v8  ;;  %v1380_v30 = vld [vmem:[%s1898_s0 + $0x68] sm:$0xff]   ;;  %v1382_v32 = vld [vmem:[%s1898_s0 + $0x70] sm:$0xff]   ;;  %v1384_v34 = vld [vmem:[%s1898_s0 + $0x78] sm:$0xff]  }
   0xc   :  { %1322 = vmatprep.mubr.msk.bf16.mxu1 %vm161_vm0, %v1359_v9  ;;  %v1381_v31 = vld [vmem:[%s1899_s1 + $0x68] sm:$0xff]   ;;  %v1383_v33 = vld [vmem:[%s1899_s1 + $0x70] sm:$0xff]   ;;  %v1385_v35 = vld [vmem:[%s1899_s1 + $0x78] sm:$0xff]  }
   0xd   :  { %v1569_v36 = vld [vmem:[%s1900_s3] ss:$0 sm:$0xff] }
   0xe   :  { %v1574_v37 = vld [vmem:[%s1901_s5] ss:$0 sm:$0xff] }
  0x12   :  { %1287 = vmatmul.mubr.msk.bf16.gmra.mrb[4].mxu0 %vm161_vm0, %v1360_v10 }
  0x13   :  { %1323 = vmatmul.mubr.msk.bf16.gmra.mrb[4].mxu1 %vm161_vm0, %v1361_v11  ;;  %1290 = vmatprep.mubr.msk.bf16.mxu0 %vm161_vm0, %v1362_v12 }
  0x14   :  { %1326 = vmatprep.mubr.msk.bf16.mxu1 %vm161_vm0, %v1363_v13 }
  0x1a   :  { %1291 = vmatmul.mubr.msk.bf16.gmra.mrb[8].mxu0 %vm161_vm0, %v1364_v14 }
  0x1b   :  { %1327 = vmatmul.mubr.msk.bf16.gmra.mrb[8].mxu1 %vm161_vm0, %v1365_v15  ;;  %1294 = vmatprep.mubr.msk.bf16.mxu0 %vm161_vm0, %v1366_v16 }
  0x1c   :  { %1330 = vmatprep.mubr.msk.bf16.mxu1 %vm161_vm0, %v1367_v17 }
  0x22   :  { %1295 = vmatmul.mubr.msk.bf16.gmra.mrb[12].mxu0 %vm161_vm0, %v1368_v18 }
  0x23   :  { %1331 = vmatmul.mubr.msk.bf16.gmra.mrb[12].mxu1 %vm161_vm0, %v1369_v19  ;;  %1298 = vmatprep.mubr.msk.bf16.mxu0 %vm161_vm0, %v1370_v20 }
  0x24   :  { %1334 = vmatprep.mubr.msk.bf16.mxu1 %vm161_vm0, %v1371_v21 }
  0x2a   :  { %1299 = vmatmul.mubr.msk.bf16.gmra.mrb[16].mxu0 %vm161_vm0, %v1372_v22 }
  0x2b   :  { %1335 = vmatmul.mubr.msk.bf16.gmra.mrb[16].mxu1 %vm161_vm0, %v1373_v23  ;;  %1302 = vmatprep.mubr.msk.bf16.mxu0 %vm161_vm0, %v1374_v24 }
  0x2c   :  { %1338 = vmatprep.mubr.msk.bf16.mxu1 %vm161_vm0, %v1375_v25 }
  0x32   :  { %1303 = vmatmul.mubr.msk.bf16.gmra.mrb[20].mxu0 %vm161_vm0, %v1376_v26 }
  0x33   :  { %1339 = vmatmul.mubr.msk.bf16.gmra.mrb[20].mxu1 %vm161_vm0, %v1377_v27  ;;  %1306 = vmatprep.mubr.msk.bf16.mxu0 %vm161_vm0, %v1378_v28 }
  0x34   :  { %1342 = vmatprep.mubr.msk.bf16.mxu1 %vm161_vm0, %v1379_v29 }
  0x3a   :  { %1307 = vmatmul.mubr.msk.bf16.gmra.mrb[24].mxu0 %vm161_vm0, %v1380_v30 }
  0x3b   :  { %1343 = vmatmul.mubr.msk.bf16.gmra.mrb[24].mxu1 %vm161_vm0, %v1381_v31  ;;  %1310 = vmatprep.mubr.msk.bf16.mxu0 %vm161_vm0, %v1382_v32 }
  0x3c   :  { %1346 = vmatprep.mubr.msk.bf16.mxu1 %vm161_vm0, %v1383_v33 }
  0x42   :  { %1311 = vmatmul.mubr.msk.bf16.gmra.mrb[28].mxu0 %vm161_vm0, %v1384_v34 }
  0x43   :  { %1347 = vmatmul.mubr.msk.bf16.gmra.mrb[28].mxu1 %vm161_vm0, %v1385_v35 }
  0xdd   :  { %v1284_v38 = vpop.f32.mrb[0].mxu0 }
  0xde   :  { %v253_v39 = vadd.f32 %v1284_v38, %v1569_v36  ;;  %v1320_v40 = vpop.f32.mrb[0].mxu1  ;;  %v244_v41 = vpop.f32.mrb[1].mxu0 }
  0xdf   :  { %v597_v42 = vadd.f32 %v1320_v40, %v1574_v37  ;;  %v245_v43 = vadd.f32 %v1569_v36, %v244_v41  ;;  %v588_v44 = vpop.f32.mrb[1].mxu1  ;;  %v1285_v45 = vpop.f32.mrb[2].mxu0 }
  0xe0   :  { %v1180_v46 = vpack.c.bf16 %v253_v39, %v253_v39  ;;  %v589_v47 = vadd.f32 %v1574_v37, %v588_v44  ;;  %v256_v48 = vadd.f32 %v1285_v45, %v1569_v36  ;;  %v1321_v49 = vpop.f32.mrb[2].mxu1  ;;  %v247_v50 = vpop.f32.mrb[3].mxu0 }
  0xe1   :  { %v1212_v51 = vpack.c.bf16 %v597_v42, %v597_v42  ;;  %v1178_v52 = vpack.c.bf16 %v245_v43, %v245_v43  ;;  %v600_v53 = vadd.f32 %v1321_v49, %v1574_v37  ;;  %v248_v54 = vadd.f32 %v1569_v36, %v247_v50  ;;  %v591_v55 = vpop.f32.mrb[3].mxu1 }
  0xe2   :  { %846 = vst.msk [vmem:[%s1902_s6 + $0x8] sm:$0xf] %vm843_vm1, %v1180_v46  ;;  %v1210_v56 = vpack.c.bf16 %v589_v47, %v589_v47  ;;  %v1181_v57 = vpack.c.bf16 %v256_v48, %v256_v48  ;;  %v592_v58 = vadd.f32 %v1574_v37, %v591_v55 }
  0xe3   :  { %1006 = vst.msk [vmem:[%s1903_s7 + $0x8] sm:$0xf] %vm843_vm1, %v1212_v51  ;;  %844 = vst.msk [vmem:[%s1902_s6] sm:$0xf] %vm843_vm1, %v1178_v52  ;;  %v1213_v59 = vpack.c.bf16 %v600_v53, %v600_v53  ;;  %v1179_v60 = vpack.c.bf16 %v248_v54, %v248_v54 }
  0xe4   :  { %1004 = vst.msk [vmem:[%s1903_s7] sm:$0xf] %vm843_vm1, %v1210_v56  ;;  %847 = vst.msk [vmem:[%s1902_s6 + $0xc] sm:$0xf] %vm843_vm1, %v1181_v57  ;;  %v1211_v61 = vpack.c.bf16 %v592_v58, %v592_v58 }
  0xe5   :  { %1007 = vst.msk [vmem:[%s1903_s7 + $0xc] sm:$0xf] %vm843_vm1, %v1213_v59  ;;  %845 = vst.msk [vmem:[%s1902_s6 + $0x4] sm:$0xf] %vm843_vm1, %v1179_v60  ;;  %v1288_v62 = vpop.f32.mrb[4].mxu0 }
  0xe6   :  { %1005 = vst.msk [vmem:[%s1903_s7 + $0x4] sm:$0xf] %vm843_vm1, %v1211_v61  ;;  %v269_v63 = vadd.f32 %v1288_v62, %v1569_v36  ;;  %v1324_v0 = vpop.f32.mrb[4].mxu1  ;;  %v260_v1 = vpop.f32.mrb[5].mxu0 }
  0xe7   :  { %v613_v2 = vadd.f32 %v1324_v0, %v1574_v37  ;;  %v261_v3 = vadd.f32 %v1569_v36, %v260_v1  ;;  %v604_v4 = vpop.f32.mrb[5].mxu1  ;;  %v1289_v5 = vpop.f32.mrb[6].mxu0 }
  0xe8   :  { %v1184_v6 = vpack.c.bf16 %v269_v63, %v269_v63  ;;  %v605_v7 = vadd.f32 %v1574_v37, %v604_v4  ;;  %v272_v8 = vadd.f32 %v1289_v5, %v1569_v36  ;;  %v1325_v9 = vpop.f32.mrb[6].mxu1  ;;  %v263_v10 = vpop.f32.mrb[7].mxu0 }
  0xe9   :  { %v1216_v11 = vpack.c.bf16 %v613_v2, %v613_v2  ;;  %v1182_v12 = vpack.c.bf16 %v261_v3, %v261_v3  ;;  %v616_v13 = vadd.f32 %v1325_v9, %v1574_v37  ;;  %v264_v14 = vadd.f32 %v1569_v36, %v263_v10  ;;  %v607_v15 = vpop.f32.mrb[7].mxu1 }
  0xea   :  { %850 = vst.msk [vmem:[%s1902_s6 + $0x18] sm:$0xf] %vm843_vm1, %v1184_v6  ;;  %v1214_v16 = vpack.c.bf16 %v605_v7, %v605_v7  ;;  %v1185_v17 = vpack.c.bf16 %v272_v8, %v272_v8  ;;  %v608_v18 = vadd.f32 %v1574_v37, %v607_v15 }
  0xeb   :  { %1010 = vst.msk [vmem:[%s1903_s7 + $0x18] sm:$0xf] %vm843_vm1, %v1216_v11  ;;  %848 = vst.msk [vmem:[%s1902_s6 + $0x10] sm:$0xf] %vm843_vm1, %v1182_v12  ;;  %v1217_v19 = vpack.c.bf16 %v616_v13, %v616_v13  ;;  %v1183_v20 = vpack.c.bf16 %v264_v14, %v264_v14 }
  0xec   :  { %1008 = vst.msk [vmem:[%s1903_s7 + $0x10] sm:$0xf] %vm843_vm1, %v1214_v16  ;;  %851 = vst.msk [vmem:[%s1902_s6 + $0x1c] sm:$0xf] %vm843_vm1, %v1185_v17  ;;  %v1215_v21 = vpack.c.bf16 %v608_v18, %v608_v18 }
  0xed   :  { %1011 = vst.msk [vmem:[%s1903_s7 + $0x1c] sm:$0xf] %vm843_vm1, %v1217_v19  ;;  %849 = vst.msk [vmem:[%s1902_s6 + $0x14] sm:$0xf] %vm843_vm1, %v1183_v20  ;;  %v1292_v22 = vpop.f32.mrb[8].mxu0 }
  0xee   :  { %1009 = vst.msk [vmem:[%s1903_s7 + $0x14] sm:$0xf] %vm843_vm1, %v1215_v21  ;;  %v285_v23 = vadd.f32 %v1292_v22, %v1569_v36  ;;  %v1328_v24 = vpop.f32.mrb[8].mxu1  ;;  %v276_v25 = vpop.f32.mrb[9].mxu0 }
  0xef   :  { %v629_v26 = vadd.f32 %v1328_v24, %v1574_v37  ;;  %v277_v27 = vadd.f32 %v1569_v36, %v276_v25  ;;  %v620_v28 = vpop.f32.mrb[9].mxu1  ;;  %v1293_v29 = vpop.f32.mrb[10].mxu0 }
  0xf0   :  { %v1188_v30 = vpack.c.bf16 %v285_v23, %v285_v23  ;;  %v621_v31 = vadd.f32 %v1574_v37, %v620_v28  ;;  %v288_v32 = vadd.f32 %v1293_v29, %v1569_v36  ;;  %v1329_v33 = vpop.f32.mrb[10].mxu1  ;;  %v279_v34 = vpop.f32.mrb[11].mxu0 }
  0xf1   :  { %v1220_v35 = vpack.c.bf16 %v629_v26, %v629_v26  ;;  %v1186_v38 = vpack.c.bf16 %v277_v27, %v277_v27  ;;  %v632_v39 = vadd.f32 %v1329_v33, %v1574_v37  ;;  %v280_v40 = vadd.f32 %v1569_v36, %v279_v34  ;;  %v623_v41 = vpop.f32.mrb[11].mxu1 }
  0xf2   :  { %854 = vst.msk [vmem:[%s1902_s6 + $0x28] sm:$0xf] %vm843_vm1, %v1188_v30  ;;  %v1218_v42 = vpack.c.bf16 %v621_v31, %v621_v31  ;;  %v1189_v43 = vpack.c.bf16 %v288_v32, %v288_v32  ;;  %v624_v44 = vadd.f32 %v1574_v37, %v623_v41 }
  0xf3   :  { %1014 = vst.msk [vmem:[%s1903_s7 + $0x28] sm:$0xf] %vm843_vm1, %v1220_v35  ;;  %852 = vst.msk [vmem:[%s1902_s6 + $0x20] sm:$0xf] %vm843_vm1, %v1186_v38  ;;  %v1221_v45 = vpack.c.bf16 %v632_v39, %v632_v39  ;;  %v1187_v46 = vpack.c.bf16 %v280_v40, %v280_v40 }
  0xf4   :  { %1012 = vst.msk [vmem:[%s1903_s7 + $0x20] sm:$0xf] %vm843_vm1, %v1218_v42  ;;  %855 = vst.msk [vmem:[%s1902_s6 + $0x2c] sm:$0xf] %vm843_vm1, %v1189_v43  ;;  %v1219_v47 = vpack.c.bf16 %v624_v44, %v624_v44 }
  0xf5   :  { %1015 = vst.msk [vmem:[%s1903_s7 + $0x2c] sm:$0xf] %vm843_vm1, %v1221_v45  ;;  %853 = vst.msk [vmem:[%s1902_s6 + $0x24] sm:$0xf] %vm843_vm1, %v1187_v46  ;;  %v1296_v48 = vpop.f32.mrb[12].mxu0 }
  0xf6   :  { %1013 = vst.msk [vmem:[%s1903_s7 + $0x24] sm:$0xf] %vm843_vm1, %v1219_v47  ;;  %v301_v49 = vadd.f32 %v1296_v48, %v1569_v36  ;;  %v1332_v50 = vpop.f32.mrb[12].mxu1  ;;  %v292_v51 = vpop.f32.mrb[13].mxu0 }
  0xf7   :  { %v645_v52 = vadd.f32 %v1332_v50, %v1574_v37  ;;  %v293_v53 = vadd.f32 %v1569_v36, %v292_v51  ;;  %v636_v54 = vpop.f32.mrb[13].mxu1  ;;  %v1297_v55 = vpop.f32.mrb[14].mxu0 }
  0xf8   :  { %v1192_v56 = vpack.c.bf16 %v301_v49, %v301_v49  ;;  %v637_v57 = vadd.f32 %v1574_v37, %v636_v54  ;;  %v304_v58 = vadd.f32 %v1297_v55, %v1569_v36  ;;  %v1333_v59 = vpop.f32.mrb[14].mxu1  ;;  %v295_v60 = vpop.f32.mrb[15].mxu0 }
  0xf9   :  { %v1224_v61 = vpack.c.bf16 %v645_v52, %v645_v52  ;;  %v1190_v62 = vpack.c.bf16 %v293_v53, %v293_v53  ;;  %v648_v63 = vadd.f32 %v1333_v59, %v1574_v37  ;;  %v296_v0 = vadd.f32 %v1569_v36, %v295_v60  ;;  %v639_v1 = vpop.f32.mrb[15].mxu1 }
  0xfa   :  { %858 = vst.msk [vmem:[%s1902_s6 + $0x38] sm:$0xf] %vm843_vm1, %v1192_v56  ;;  %v1222_v2 = vpack.c.bf16 %v637_v57, %v637_v57  ;;  %v1193_v3 = vpack.c.bf16 %v304_v58, %v304_v58  ;;  %v640_v4 = vadd.f32 %v1574_v37, %v639_v1 }
  0xfb   :  { %1018 = vst.msk [vmem:[%s1903_s7 + $0x38] sm:$0xf] %vm843_vm1, %v1224_v61  ;;  %856 = vst.msk [vmem:[%s1902_s6 + $0x30] sm:$0xf] %vm843_vm1, %v1190_v62  ;;  %v1225_v5 = vpack.c.bf16 %v648_v63, %v648_v63  ;;  %v1191_v6 = vpack.c.bf16 %v296_v0, %v296_v0 }
  0xfc   :  { %1016 = vst.msk [vmem:[%s1903_s7 + $0x30] sm:$0xf] %vm843_vm1, %v1222_v2  ;;  %859 = vst.msk [vmem:[%s1902_s6 + $0x3c] sm:$0xf] %vm843_vm1, %v1193_v3  ;;  %v1223_v7 = vpack.c.bf16 %v640_v4, %v640_v4 }
  0xfd   :  { %1019 = vst.msk [vmem:[%s1903_s7 + $0x3c] sm:$0xf] %vm843_vm1, %v1225_v5  ;;  %857 = vst.msk [vmem:[%s1902_s6 + $0x34] sm:$0xf] %vm843_vm1, %v1191_v6  ;;  %v1300_v8 = vpop.f32.mrb[16].mxu0 }
  0xfe   :  { %1017 = vst.msk [vmem:[%s1903_s7 + $0x34] sm:$0xf] %vm843_vm1, %v1223_v7  ;;  %v317_v9 = vadd.f32 %v1300_v8, %v1569_v36  ;;  %v1336_v10 = vpop.f32.mrb[16].mxu1  ;;  %v308_v11 = vpop.f32.mrb[17].mxu0 }
  0xff   :  { %v661_v12 = vadd.f32 %v1336_v10, %v1574_v37  ;;  %v309_v13 = vadd.f32 %v1569_v36, %v308_v11  ;;  %v652_v14 = vpop.f32.mrb[17].mxu1  ;;  %v1301_v15 = vpop.f32.mrb[18].mxu0 }
 0x100   :  { %v1196_v16 = vpack.c.bf16 %v317_v9, %v317_v9  ;;  %v653_v17 = vadd.f32 %v1574_v37, %v652_v14  ;;  %v320_v18 = vadd.f32 %v1301_v15, %v1569_v36  ;;  %v1337_v19 = vpop.f32.mrb[18].mxu1  ;;  %v311_v20 = vpop.f32.mrb[19].mxu0 }
 0x101   :  { %v1228_v21 = vpack.c.bf16 %v661_v12, %v661_v12  ;;  %v1194_v22 = vpack.c.bf16 %v309_v13, %v309_v13  ;;  %v664_v23 = vadd.f32 %v1337_v19, %v1574_v37  ;;  %v312_v24 = vadd.f32 %v1569_v36, %v311_v20  ;;  %v655_v25 = vpop.f32.mrb[19].mxu1 }
 0x102   :  { %862 = vst.msk [vmem:[%s1902_s6 + $0x48] sm:$0xf] %vm843_vm1, %v1196_v16  ;;  %v1226_v26 = vpack.c.bf16 %v653_v17, %v653_v17  ;;  %v1197_v27 = vpack.c.bf16 %v320_v18, %v320_v18  ;;  %v656_v28 = vadd.f32 %v1574_v37, %v655_v25 }
 0x103   :  { %1022 = vst.msk [vmem:[%s1903_s7 + $0x48] sm:$0xf] %vm843_vm1, %v1228_v21  ;;  %860 = vst.msk [vmem:[%s1902_s6 + $0x40] sm:$0xf] %vm843_vm1, %v1194_v22  ;;  %v1229_v29 = vpack.c.bf16 %v664_v23, %v664_v23  ;;  %v1195_v30 = vpack.c.bf16 %v312_v24, %v312_v24 }
 0x104   :  { %1020 = vst.msk [vmem:[%s1903_s7 + $0x40] sm:$0xf] %vm843_vm1, %v1226_v26  ;;  %863 = vst.msk [vmem:[%s1902_s6 + $0x4c] sm:$0xf] %vm843_vm1, %v1197_v27  ;;  %v1227_v31 = vpack.c.bf16 %v656_v28, %v656_v28 }
 0x105   :  { %1023 = vst.msk [vmem:[%s1903_s7 + $0x4c] sm:$0xf] %vm843_vm1, %v1229_v29  ;;  %861 = vst.msk [vmem:[%s1902_s6 + $0x44] sm:$0xf] %vm843_vm1, %v1195_v30  ;;  %v1304_v32 = vpop.f32.mrb[20].mxu0 }
 0x106   :  { %1021 = vst.msk [vmem:[%s1903_s7 + $0x44] sm:$0xf] %vm843_vm1, %v1227_v31  ;;  %v333_v33 = vadd.f32 %v1304_v32, %v1569_v36  ;;  %v1340_v34 = vpop.f32.mrb[20].mxu1  ;;  %v324_v35 = vpop.f32.mrb[21].mxu0 }
 0x107   :  { %v677_v38 = vadd.f32 %v1340_v34, %v1574_v37  ;;  %v325_v39 = vadd.f32 %v1569_v36, %v324_v35  ;;  %v668_v40 = vpop.f32.mrb[21].mxu1  ;;  %v1305_v41 = vpop.f32.mrb[22].mxu0 }
 0x108   :  { %v1200_v42 = vpack.c.bf16 %v333_v33, %v333_v33  ;;  %v669_v43 = vadd.f32 %v1574_v37, %v668_v40  ;;  %v336_v44 = vadd.f32 %v1305_v41, %v1569_v36  ;;  %v1341_v45 = vpop.f32.mrb[22].mxu1  ;;  %v327_v46 = vpop.f32.mrb[23].mxu0 }
 0x109   :  { %v1232_v47 = vpack.c.bf16 %v677_v38, %v677_v38  ;;  %v1198_v48 = vpack.c.bf16 %v325_v39, %v325_v39  ;;  %v680_v49 = vadd.f32 %v1341_v45, %v1574_v37  ;;  %v328_v50 = vadd.f32 %v1569_v36, %v327_v46  ;;  %v671_v51 = vpop.f32.mrb[23].mxu1 }
 0x10a   :  { %866 = vst.msk [vmem:[%s1902_s6 + $0x58] sm:$0xf] %vm843_vm1, %v1200_v42  ;;  %v1230_v52 = vpack.c.bf16 %v669_v43, %v669_v43  ;;  %v1201_v53 = vpack.c.bf16 %v336_v44, %v336_v44  ;;  %v672_v54 = vadd.f32 %v1574_v37, %v671_v51 }
 0x10b   :  { %1026 = vst.msk [vmem:[%s1903_s7 + $0x58] sm:$0xf] %vm843_vm1, %v1232_v47  ;;  %864 = vst.msk [vmem:[%s1902_s6 + $0x50] sm:$0xf] %vm843_vm1, %v1198_v48  ;;  %v1233_v55 = vpack.c.bf16 %v680_v49, %v680_v49  ;;  %v1199_v56 = vpack.c.bf16 %v328_v50, %v328_v50 }
 0x10c   :  { %1024 = vst.msk [vmem:[%s1903_s7 + $0x50] sm:$0xf] %vm843_vm1, %v1230_v52  ;;  %867 = vst.msk [vmem:[%s1902_s6 + $0x5c] sm:$0xf] %vm843_vm1, %v1201_v53  ;;  %v1231_v57 = vpack.c.bf16 %v672_v54, %v672_v54 }
 0x10d   :  { %1027 = vst.msk [vmem:[%s1903_s7 + $0x5c] sm:$0xf] %vm843_vm1, %v1233_v55  ;;  %865 = vst.msk [vmem:[%s1902_s6 + $0x54] sm:$0xf] %vm843_vm1, %v1199_v56  ;;  %v1308_v58 = vpop.f32.mrb[24].mxu0 }
 0x10e   :  { %1025 = vst.msk [vmem:[%s1903_s7 + $0x54] sm:$0xf] %vm843_vm1, %v1231_v57  ;;  %v349_v59 = vadd.f32 %v1308_v58, %v1569_v36  ;;  %v1344_v60 = vpop.f32.mrb[24].mxu1  ;;  %v340_v61 = vpop.f32.mrb[25].mxu0 }
 0x10f   :  { %v693_v62 = vadd.f32 %v1344_v60, %v1574_v37  ;;  %v341_v63 = vadd.f32 %v1569_v36, %v340_v61  ;;  %v684_v0 = vpop.f32.mrb[25].mxu1  ;;  %v1309_v1 = vpop.f32.mrb[26].mxu0 }
 0x110   :  { %v1204_v2 = vpack.c.bf16 %v349_v59, %v349_v59  ;;  %v685_v3 = vadd.f32 %v1574_v37, %v684_v0  ;;  %v352_v4 = vadd.f32 %v1309_v1, %v1569_v36  ;;  %v1345_v5 = vpop.f32.mrb[26].mxu1  ;;  %v343_v6 = vpop.f32.mrb[27].mxu0 }
 0x111   :  { %v1236_v7 = vpack.c.bf16 %v693_v62, %v693_v62  ;;  %v1202_v8 = vpack.c.bf16 %v341_v63, %v341_v63  ;;  %v696_v9 = vadd.f32 %v1345_v5, %v1574_v37  ;;  %v344_v10 = vadd.f32 %v1569_v36, %v343_v6  ;;  %v687_v11 = vpop.f32.mrb[27].mxu1 }
 0x112   :  { %870 = vst.msk [vmem:[%s1902_s6 + $0x68] sm:$0xf] %vm843_vm1, %v1204_v2  ;;  %v1234_v12 = vpack.c.bf16 %v685_v3, %v685_v3  ;;  %v1205_v13 = vpack.c.bf16 %v352_v4, %v352_v4  ;;  %v688_v14 = vadd.f32 %v1574_v37, %v687_v11 }
 0x113   :  { %1030 = vst.msk [vmem:[%s1903_s7 + $0x68] sm:$0xf] %vm843_vm1, %v1236_v7  ;;  %868 = vst.msk [vmem:[%s1902_s6 + $0x60] sm:$0xf] %vm843_vm1, %v1202_v8  ;;  %v1237_v15 = vpack.c.bf16 %v696_v9, %v696_v9  ;;  %v1203_v16 = vpack.c.bf16 %v344_v10, %v344_v10 }
 0x114   :  { %1028 = vst.msk [vmem:[%s1903_s7 + $0x60] sm:$0xf] %vm843_vm1, %v1234_v12  ;;  %871 = vst.msk [vmem:[%s1902_s6 + $0x6c] sm:$0xf] %vm843_vm1, %v1205_v13  ;;  %v1235_v17 = vpack.c.bf16 %v688_v14, %v688_v14 }
 0x115   :  { %1031 = vst.msk [vmem:[%s1903_s7 + $0x6c] sm:$0xf] %vm843_vm1, %v1237_v15  ;;  %869 = vst.msk [vmem:[%s1902_s6 + $0x64] sm:$0xf] %vm843_vm1, %v1203_v16  ;;  %v1312_v18 = vpop.f32.mrb[28].mxu0 }
 0x116   :  { %1029 = vst.msk [vmem:[%s1903_s7 + $0x64] sm:$0xf] %vm843_vm1, %v1235_v17  ;;  %v365_v19 = vadd.f32 %v1312_v18, %v1569_v36  ;;  %v1348_v20 = vpop.f32.mrb[28].mxu1  ;;  %v356_v21 = vpop.f32.mrb[29].mxu0 }
 0x117   :  { %v709_v22 = vadd.f32 %v1348_v20, %v1574_v37  ;;  %v357_v23 = vadd.f32 %v1569_v36, %v356_v21  ;;  %v700_v24 = vpop.f32.mrb[29].mxu1  ;;  %v1313_v25 = vpop.f32.mrb[30].mxu0 }
 0x118   :  { %v1208_v26 = vpack.c.bf16 %v365_v19, %v365_v19  ;;  %v701_v27 = vadd.f32 %v1574_v37, %v700_v24  ;;  %v368_v28 = vadd.f32 %v1313_v25, %v1569_v36  ;;  %v1349_v29 = vpop.f32.mrb[30].mxu1  ;;  %v359_v30 = vpop.f32.mrb[31].mxu0 }
 0x119   :  { %v1240_v31 = vpack.c.bf16 %v709_v22, %v709_v22  ;;  %v1206_v32 = vpack.c.bf16 %v357_v23, %v357_v23  ;;  %v712_v33 = vadd.f32 %v1349_v29, %v1574_v37  ;;  %v360_v34 = vadd.f32 %v1569_v36, %v359_v30  ;;  %v703_v35 = vpop.f32.mrb[31].mxu1 }
 0x11a   :  { %874 = vst.msk [vmem:[%s1902_s6 + $0x78] sm:$0xf] %vm843_vm1, %v1208_v26  ;;  %v1238_v38 = vpack.c.bf16 %v701_v27, %v701_v27  ;;  %v1209_v39 = vpack.c.bf16 %v368_v28, %v368_v28  ;;  %v704_v40 = vadd.f32 %v1574_v37, %v703_v35 }
 0x11b   :  { %1034 = vst.msk [vmem:[%s1903_s7 + $0x78] sm:$0xf] %vm843_vm1, %v1240_v31  ;;  %872 = vst.msk [vmem:[%s1902_s6 + $0x70] sm:$0xf] %vm843_vm1, %v1206_v32  ;;  %v1241_v36 = vpack.c.bf16 %v712_v33, %v712_v33  ;;  %v1207_v41 = vpack.c.bf16 %v360_v34, %v360_v34 }
 0x11c   :  { %1032 = vst.msk [vmem:[%s1903_s7 + $0x70] sm:$0xf] %vm843_vm1, %v1238_v38  ;;  %875 = vst.msk [vmem:[%s1902_s6 + $0x7c] sm:$0xf] %vm843_vm1, %v1209_v39  ;;  %v1239_v37 = vpack.c.bf16 %v704_v40, %v704_v40 }
 0x11d   :  { %1035 = vst.msk [vmem:[%s1903_s7 + $0x7c] sm:$0xf] %vm843_vm1, %v1241_v36  ;;  %873 = vst.msk [vmem:[%s1902_s6 + $0x74] sm:$0xf] %vm843_vm1, %v1207_v41 }
 0x11e   :  { %1033 = vst.msk [vmem:[%s1903_s7 + $0x74] sm:$0xf] %vm843_vm1, %v1239_v37 }

</bundles_post_ra>
